<compile_context>
chip_gen: v5e
topology: v5e:2x2
jax: 0.10.0
libtpu: 0.0.40
codegen_flags: <defaults>
</compile_context>

<pallas_src>
import numpy as np
import jax
import jax.numpy as jnp
from jax.experimental import pallas as pl
from jax.experimental.pallas import tpu as pltpu


# ---------------------------------------------------------------------------
# Parameter setup (deterministic, in-script): least-squares fit of SiLU on
# [-B, B] -- mirrors PolyFit.__init__ with initialization='least_square'.
# ---------------------------------------------------------------------------
def least_square_fit_silu(B, samp_size, pol_degree):
    x_points = np.linspace(-B, B, samp_size)
    y_points = x_points / (1.0 + np.exp(-x_points))  # silu
    if pol_degree == -1:
        pol_degree = len(x_points) - 1
    # np.polyfit returns coefficients in DESCENDING power order,
    # matching exponents = arange(deg, -1, -1) in the torch module.
    return np.polyfit(x_points, y_points, pol_degree).astype(np.float32)


# ---------------------------------------------------------------------------
# Pallas kernel: Horner polynomial eval + lane-dense l2 boundary-loss partial.
# Coefficients are baked as compile-time constants (frozen buffer at inference).
# TODO(synk): trainable-coefficient case would re-introduce an SMEM operand.
# ---------------------------------------------------------------------------
def _make_polyfit_kernel(coefficients, penalty_B):
    coeffs = tuple(float(c) for c in np.asarray(coefficients, dtype=np.float32))
    ncoef = len(coeffs)
    penalty_B = float(penalty_B)

    def kernel(x_ref, y_ref, bl_ref):
        xf = x_ref[...].astype(jnp.float32)          # (tile_r, W)

        # Horner's scheme, descending-power constants; no splat for the init.
        if ncoef == 1:
            acc = jnp.full_like(xf, coeffs[0])
        else:
            acc = xf * coeffs[0] + coeffs[1]
            for c in coeffs[2:]:
                acc = acc * xf + c
        y_ref[...] = acc.astype(y_ref.dtype)

        # Boundary loss (b_type == 'l2') partial: reduce over rows only; the
        # cross-lane reduce happens once in the wrapper.
        excess = jnp.maximum(jnp.abs(xf) - penalty_B, 0.0)
        bl_ref[...] = jnp.sum(excess * excess, axis=0, keepdims=True)

    return kernel


# ---------------------------------------------------------------------------
# Layout / tiling selection (avoid wrapper-side copies whenever possible).
# ---------------------------------------------------------------------------
_TILE_BYTES = 4 * 1024 * 1024   # ~4 MiB per buffer -> near HBM-roofline plateau


def _choose_width(total):
    for cand in (1024, 512, 256, 128):
        if total % cand == 0:
            return cand
    return 128  # ragged fallback: minimal 1-D pad handled by the wrapper


def _choose_tile_rows(rows, W, itemsize, sub):
    budget_rows = max(sub, _TILE_BYTES // (W * itemsize))
    divisors = [t for t in range(sub, min(rows, budget_rows) + 1, sub)
                if rows % t == 0]
    if divisors:
        # Prefer an even number of grid blocks (v7x 2-TC sharding), largest tile.
        even = [t for t in divisors if (rows // t) % 2 == 0]
        return (max(even) if even else max(divisors)), False
    if rows * W * itemsize <= 2 * _TILE_BYTES:
        return rows, False              # single full-extent block (always legal)
    # No usable divisor and too big for one block: pad rows (rare path).
    return max(sub, (budget_rows // sub) * sub), True


def polyfit_forward(x, coefficients, penalty_B):
    """x: any-shape float array. Returns (poly(x) same shape/dtype, boundary_loss scalar)."""
    orig_shape = x.shape
    orig_dtype = x.dtype
    total = int(np.prod(orig_shape)) if len(orig_shape) else 1
    itemsize = jnp.dtype(orig_dtype).itemsize
    sub = {4: 8, 2: 16, 1: 32}.get(itemsize, 8)   # sublane quantum per dtype

    # Lane-dense slab: wide last dim -> unmasked full-width stores, fat DMAs.
    W = _choose_width(total)
    rows = -(-total // W)
    lane_pad = rows * W - total

    flat = x.reshape(-1)
    if lane_pad:                       # rare: flattened size not a 128 multiple
        flat = jnp.pad(flat, (0, lane_pad))
    flat = flat.reshape(rows, W)

    tile_r, need_row_pad = _choose_tile_rows(rows, W, itemsize, sub)
    row_pad = 0
    if need_row_pad:                   # rare: rows has no usable divisor
        padded_rows = -(-rows // tile_r) * tile_r
        row_pad = padded_rows - rows
        flat = jnp.pad(flat, ((0, row_pad), (0, 0)))
        rows = padded_rows
    num_blocks = rows // tile_r

    kernel = _make_polyfit_kernel(coefficients, penalty_B)

    y2d, bl_parts = pl.pallas_call(
        kernel,
        grid=(num_blocks,),
        out_shape=(
            jax.ShapeDtypeStruct((rows, W), orig_dtype),
            jax.ShapeDtypeStruct((num_blocks, W), jnp.float32),
        ),
        in_specs=[
            pl.BlockSpec((tile_r, W), lambda i: (i, 0)),     # x tile (pipelined)
        ],
        out_specs=(
            pl.BlockSpec((tile_r, W), lambda i: (i, 0)),     # poly(x) tile
            pl.BlockSpec((1, W), lambda i: (i, 0)),          # lane-dense bl partial
        ),
        compiler_params=pltpu.CompilerParams(
            dimension_semantics=("parallel",),   # per-block partials -> axis stays parallel
            vmem_limit_bytes=32 * 1024 * 1024,
        ),
    )(flat)

    # Final boundary-loss reduce; correct exactly for any zero-padded elements.
    pad_count = lane_pad + row_pad * W
    bl_sum = jnp.sum(bl_parts)
    if pad_count:
        bl_sum = bl_sum - pad_count * float(max(-float(penalty_B), 0.0)) ** 2
    bl = bl_sum / float(total)

    if pad_count:
        y = y2d.reshape(-1)[:total].reshape(orig_shape)
    else:
        y = y2d.reshape(orig_shape)    # pure metadata reshape, no copy
    return y, bl


# ---------------------------------------------------------------------------
# Pure-JAX reference (mirrors the torch forward exactly) for a sanity check.
# ---------------------------------------------------------------------------
def polyfit_reference(x, coefficients, penalty_B):
    deg = coefficients.shape[0] - 1
    exponents = jnp.arange(deg, -1, -1, dtype=jnp.float32)
    powers = jnp.power(x[..., None].astype(jnp.float32), exponents)
    result = jnp.sum(coefficients * powers, axis=-1)
    excess = jnp.maximum(jnp.abs(x).astype(jnp.float32) - penalty_B, 0.0)
    bl = jnp.mean(excess ** 2)
    return result, bl


if __name__ == "__main__":
    # Module config (as PolyFit.__init__ would see it):
    B = 5.0
    samp_size = 100
    pol_degree = 4
    penalty_B = 5.0  # boundary_loss_params = {'type': 'l2', 'penalty_B': 5.0}

    coeffs_np = least_square_fit_silu(B, samp_size, pol_degree)
    coefficients = jnp.asarray(coeffs_np)

    # Small deterministic NCHW input (primary test): grid=(1,), full-extent block.
    x = jax.random.normal(jax.random.PRNGKey(0), (2, 4, 16, 16), dtype=jnp.float32) * 3.0
    y, bl = polyfit_forward(x, coefficients, penalty_B)
    y = jax.block_until_ready(y)
    bl = jax.block_until_ready(bl)

    y_ref, bl_ref = polyfit_reference(x, coefficients, penalty_B)
    assert y.shape == x.shape and y.dtype == x.dtype
    np.testing.assert_allclose(np.asarray(y), np.asarray(y_ref), rtol=1e-4, atol=1e-3)
    np.testing.assert_allclose(np.asarray(bl), np.asarray(bl_ref), rtol=1e-4, atol=1e-6)

    # Larger input exercising the tiled / pipelined path (even block count,
    # no wrapper-side pad or slice: 786432 elems -> (768, 1024), tile_r=384).
    x_big = jax.random.normal(jax.random.PRNGKey(1), (4, 32, 96, 64), dtype=jnp.float32) * 3.0
    y2, bl2 = polyfit_forward(x_big, coefficients, penalty_B)
    y2 = jax.block_until_ready(y2)
    bl2 = jax.block_until_ready(bl2)

    y2_ref, bl2_ref = polyfit_reference(x_big, coefficients, penalty_B)
    assert y2.shape == x_big.shape and y2.dtype == x_big.dtype
    np.testing.assert_allclose(np.asarray(y2), np.asarray(y2_ref), rtol=1e-4, atol=1e-3)
    np.testing.assert_allclose(np.asarray(bl2), np.asarray(bl2_ref), rtol=1e-4, atol=1e-6)

    print("KERNEL_OK")
</pallas_src>

<mosaic_0001>
module attributes {stable_mosaic.version = 11 : i64} {
  func.func @kernel(%arg0: i32, %arg1: memref<2x1024xf32, #tpu.memory_space<vmem>>, %arg2: memref<2x1024xf32, #tpu.memory_space<vmem>>, %arg3: memref<1x1024xf32, #tpu.memory_space<vmem>>) attributes {dimension_semantics = [#tpu.dimension_semantics<parallel>], iteration_bounds = array<i64: 1>, scalar_prefetch = 0 : i64, scratch_operands = 0 : i64, tpu.core_type = #tpu.core_type<tc>, window_params = [{transform_indices = @transform_0, window_bounds = array<i64: 2, 1024>}, {transform_indices = @transform_1, window_bounds = array<i64: 2, 1024>}, {transform_indices = @transform_2, window_bounds = array<i64: 1, 1024>}]} {
    %c0 = arith.constant 0 : index
    %c0_0 = arith.constant 0 : index
    %0 = vector.load %arg1[%c0, %c0_0] : memref<2x1024xf32, #tpu.memory_space<vmem>>, vector<2x1024xf32>
    %cst = arith.constant -0.00308873598 : f32
    %1 = vector.broadcast %cst : f32 to vector<2x1024xf32>
    %2 = arith.mulf %0, %1 : vector<2x1024xf32>
    %cst_1 = arith.constant 2.18966702E-17 : f32
    %3 = vector.broadcast %cst_1 : f32 to vector<2x1024xf32>
    %4 = arith.addf %2, %3 : vector<2x1024xf32>
    %5 = arith.mulf %4, %0 : vector<2x1024xf32>
    %cst_2 = arith.constant 0.168982059 : f32
    %6 = vector.broadcast %cst_2 : f32 to vector<2x1024xf32>
    %7 = arith.addf %5, %6 : vector<2x1024xf32>
    %8 = arith.mulf %7, %0 : vector<2x1024xf32>
    %cst_3 = arith.constant 5.000000e-01 : f32
    %9 = vector.broadcast %cst_3 : f32 to vector<2x1024xf32>
    %10 = arith.addf %8, %9 : vector<2x1024xf32>
    %11 = arith.mulf %10, %0 : vector<2x1024xf32>
    %cst_4 = arith.constant 0.0725492612 : f32
    %12 = vector.broadcast %cst_4 : f32 to vector<2x1024xf32>
    %13 = arith.addf %11, %12 : vector<2x1024xf32>
    %c0_5 = arith.constant 0 : index
    %c0_6 = arith.constant 0 : index
    %14 = vector.load %arg2[%c0_5, %c0_6] : memref<2x1024xf32, #tpu.memory_space<vmem>>, vector<2x1024xf32>
    tpu.vector_store %arg2[%c0_5, %c0_6], %13 {strides = array<i32>} : memref<2x1024xf32, #tpu.memory_space<vmem>>, vector<2x1024xf32>,
    %15 = math.absf %0 : vector<2x1024xf32>
    %cst_7 = arith.constant 5.000000e+00 : f32
    %16 = vector.broadcast %cst_7 : f32 to vector<2x1024xf32>
    %17 = arith.subf %15, %16 : vector<2x1024xf32>
    %cst_8 = arith.constant 0.000000e+00 : f32
    %18 = vector.broadcast %cst_8 : f32 to vector<2x1024xf32>
    %19 = arith.maximumf %17, %18 : vector<2x1024xf32>
    %20 = arith.mulf %19, %19 : vector<2x1024xf32>
    %cst_9 = arith.constant dense<0.000000e+00> : vector<1024xf32>
    %21 = vector.multi_reduction <add>, %20, %cst_9 [0] : vector<2x1024xf32> to vector<1024xf32>
    %22 = vector.shape_cast %21 : vector<1024xf32> to vector<1x1024xf32>
    %c0_10 = arith.constant 0 : index
    %c0_11 = arith.constant 0 : index
    %23 = vector.load %arg3[%c0_10, %c0_11] : memref<1x1024xf32, #tpu.memory_space<vmem>>, vector<1x1024xf32>
    tpu.vector_store %arg3[%c0_10, %c0_11], %22 {strides = array<i32>} : memref<1x1024xf32, #tpu.memory_space<vmem>>, vector<1x1024xf32>,
    return
  }
  func.func @transform_0(%arg0: i32) -> (i32, i32) {
    %c0_i32 = arith.constant 0 : i32
    %c0_i32_0 = arith.constant 0 : i32
    return %arg0, %c0_i32 : i32, i32
  }
  func.func @transform_1(%arg0: i32) -> (i32, i32) {
    %c0_i32 = arith.constant 0 : i32
    %c0_i32_0 = arith.constant 0 : i32
    return %arg0, %c0_i32 : i32, i32
  }
  func.func @transform_2(%arg0: i32) -> (i32, i32) {
    %c0_i32 = arith.constant 0 : i32
    %c0_i32_0 = arith.constant 0 : i32
    return %arg0, %c0_i32 : i32, i32
  }
}

</mosaic_0001>

<bundles_post_ra>
// kernel: tpu_custom_call.1
= control target key start
LH: loop header
LB: loop body
LE: loop exit
PB: predicated region body
PF: predicated region fallthrough
CT: control target
= control target key end

     0   :  { %8 = vsyncpa [#allocation3], 0  ;;  %s315_s0 = inlined_call_operand.hbm [shape: f32[2,1024], index: 0, kind: input, shape index: {}]   ;;  %s316_s1 = inlined_call_operand.hbm [shape: f32[2,1024], index: 1, kind: output, shape index: {0}]   ;;  %s317_s2 = inlined_call_operand.hbm [shape: f32[1,1024], index: 2, kind: output, shape index: {1}]  }
   0x1   :  { %9 = vsyncpa [#allocation4], 0 }
   0x2   :  { %10 = vsyncpa [#allocation7], 0  ;;  %s16_s11 = sshll.u32 %s315_s0, 4  ;;  %s278_s12 = smov [#allocation2]   ;;  %s17_s11 = int_to_ptr.hbm [resolvable:$true] %s16_s11 }
   0x3   :  { %s18_s13 = sshll.u32 %s278_s12, 4  ;;  %s19_s13 = int_to_ptr.vmem [resolvable:$true] %s18_s13 }
   0x4   :  { %21 = dma.hbm_to_vmem [thread:$0]  %s17_s11, 256, %s19_s13, [#allocation3]  }
   0x5   :  { %272 = dma.done.wait [#allocation3], 256  }
   0x6   :  { %273 = vsyncadd [#allocation3], 4294967040  ;;  %v26_v0 = vld [vmem:[#allocation2] sm:$0xff]  ;;  %v27_v1 = vld [vmem:[#allocation2 + $0x8] sm:$0xff]  ;;  %vm75_vm0 = vcmask 1041408   ;;  %s169_s15 = sshll.u32 %s316_s1, 4  ;;  %s170_s15 = int_to_ptr.hbm [resolvable:$true] %s169_s15 }
   0x7   :  { %v46_v2 = vand.u32 2147483647, %v26_v0  ;;  %v47_v3 = vand.u32 2147483647, %v27_v1  ;;  %v28_v4 = vmul.f32 -0.003088736, %v26_v0 }
   0x8   :  { %v29_v5 = vmul.f32 -0.003088736, %v27_v1  ;;  %s279_s16 = smov [#allocation5]   ;;  %vm147_vm1 = vcmask 1040384   ;;  %vm149_vm2 = vcmask 1042434   ;;  %vm152_vm3 = vcmask 1044484  }
   0x9   :  { %v195_v6 = vadd.f32 -5.0, %v46_v2  ;;  %v196_v7 = vadd.f32 -5.0, %v47_v3  ;;  %v30_v8 = vadd.f32 2.189667e-17, %v28_v4  ;;  %s167_s17 = sshll.u32 %s279_s16, 4  ;;  %vm154_vm4 = vcmask 1046534   ;;  %s168_s17 = int_to_ptr.vmem [resolvable:$true] %s167_s17 }
   0xa   :  { %v31_v9 = vadd.f32 2.189667e-17, %v29_v5  ;;  %vm156_vm5 = vcmask 1045508   ;;  %s280_s1 = smov [#allocation6]   ;;  %s180_s21 = sshll.u32 %s317_s2, 4  ;;  %vm158_vm6 = vcmask 1043456   ;;  %s181_s21 = int_to_ptr.hbm [resolvable:$true] %s180_s21 }
   0xb   :  { %v50_v10 = vmax.f32 %v195_v6, 0.0  ;;  %v51_v11 = vmax.f32 %v196_v7, 0.0  ;;  %v32_v12 = vmul.f32 %v30_v8, %v26_v0  ;;  %s178_s18 = sshll.u32 %s280_s1, 4  ;;  %s179_s18 = int_to_ptr.vmem [resolvable:$true] %s178_s18 }
   0xc   :  { %v33_v13 = vmul.f32 %v31_v9, %v27_v1 }
   0xd   :  { %v52_v14 = vmul.f32 %v50_v10, %v50_v10  ;;  %v53_v15 = vmul.f32 %v51_v11, %v51_v11  ;;  %v34_v16 = vadd.f32 0.16898206, %v32_v12 }
   0xe   :  { %v35_v17 = vadd.f32 0.16898206, %v33_v13 }
   0xf   :  { %56 = vst [vmem:[#allocation1] ss:$4 sm:$0xff] %v52_v14  ;;  %v36_v18 = vmul.f32 %v34_v16, %v26_v0 }
  0x10   :  { %58 = vst [vmem:[#allocation1 + $0x20] ss:$4 sm:$0xff] %v53_v15  ;;  %v37_v19 = vmul.f32 %v35_v17, %v27_v1 }
  0x11   :  { %v38_v20 = vadd.f32 0.5, %v36_v18 }
  0x12   :  { %v39_v21 = vadd.f32 0.5, %v37_v19 }
  0x13   :  { %v40_v22 = vmul.f32 %v38_v20, %v26_v0 }
  0x14   :  { %v41_v23 = vmul.f32 %v39_v21, %v27_v1 }
  0x15   :  { %v42_v24 = vadd.f32 0.07254926, %v40_v22 }
  0x16   :  { %v43_v25 = vadd.f32 0.07254926, %v41_v23  ;;  %v59_v26 = vld.sshfl [vmem:[#allocation1] sm:$0xff pattern:$0x73625140] }
  0x17   :  { %44 = vst [vmem:[#allocation5] sm:$0xff] %v42_v24  ;;  %v60_v27 = vld.sshfl [vmem:[#allocation1 + $0x8] sm:$0xff pattern:$0x73625140]  ;;  %v76_v28 = vsel %vm75_vm0, %v59_v26, 0.0 }
  0x18   :  { %45 = vst [vmem:[#allocation5 + $0x8] sm:$0xff] %v43_v25  ;;  %v61_v29 = vld.sshfl [vmem:[#allocation1 + $0x10] sm:$0xff pattern:$0x73625140]  ;;  %v77_v30 = vrot.slane %v76_v28, 4  ;;  %v83_v31 = vsel %vm75_vm0, %v60_v27, 0.0 }
  0x19   :  { %v62_v32 = vld.sshfl [vmem:[#allocation1 + $0x18] sm:$0xff pattern:$0x73625140]  ;;  %v63_v33 = vld.sshfl [vmem:[#allocation1 + $0x20] sm:$0xff pattern:$0x73625140] }
  0x1a   :  { %v64_v34 = vld.sshfl [vmem:[#allocation1 + $0x28] sm:$0xff pattern:$0x73625140]  ;;  %v65_v35 = vld.sshfl [vmem:[#allocation1 + $0x30] sm:$0xff pattern:$0x73625140]  ;;  %v78_v36 = vadd.f32 %v77_v30, %v76_v28 }
  0x1b   :  { %v66_v37 = vld.sshfl [vmem:[#allocation1 + $0x38] sm:$0xff pattern:$0x73625140]  ;;  %v84_v38 = vrot.slane %v83_v31, 4  ;;  %v90_v39 = vsel %vm75_vm0, %v61_v29, 0.0  ;;  %v97_v40 = vsel %vm75_vm0, %v62_v32, 0.0 }
  0x1c   :  { %v79_v41 = vrot.slane %v78_v36, 2  ;;  %v91_v42 = vrot.slane %v90_v39, 4  ;;  %v98_v43 = vrot.slane %v97_v40, 4  ;;  %v104_v44 = vsel %vm75_vm0, %v63_v33, 0.0  ;;  %172 = dma.vmem_to_hbm [thread:$0]  %s168_s17, 256, %s170_s15, [#allocation4]  }
  0x1d   :  { %v85_v45 = vadd.f32 %v84_v38, %v83_v31  ;;  %v105_v46 = vrot.slane %v104_v44, 4  ;;  %v111_v47 = vsel %vm75_vm0, %v64_v34, 0.0  ;;  %v118_v48 = vsel %vm75_vm0, %v65_v35, 0.0 }
  0x1e   :  { %v92_v49 = vadd.f32 %v91_v42, %v90_v39  ;;  %v99_v50 = vadd.f32 %v98_v43, %v97_v40  ;;  %v112_v51 = vrot.slane %v111_v47, 4  ;;  %v119_v54 = vrot.slane %v118_v48, 4 }
  0x1f   :  { %v86_v52 = vrot.slane %v85_v45, 2  ;;  %v106_v53 = vadd.f32 %v105_v46, %v104_v44  ;;  %v125_v55 = vsel %vm75_vm0, %v66_v37, 0.0  ;;  %v80_v56 = vadd.f32 %v79_v41, %v78_v36 }
  0x20   :  { %v93_v57 = vrot.slane %v92_v49, 2  ;;  %v100_v58 = vrot.slane %v99_v50, 2  ;;  %v113_v59 = vadd.f32 %v112_v51, %v111_v47  ;;  %v120_v62 = vadd.f32 %v119_v54, %v118_v48 }
  0x21   :  { %v87_v60 = vadd.f32 %v86_v52, %v85_v45  ;;  %v107_v61 = vrot.slane %v106_v53, 2  ;;  %v126_v63 = vrot.slane %v125_v55, 4  ;;  %v81_v7 = vrot.slane %v80_v56, 1 }
  0x22   :  { %v94_v0 = vadd.f32 %v93_v57, %v92_v49  ;;  %v101_v1 = vadd.f32 %v100_v58, %v99_v50  ;;  %v114_v2 = vrot.slane %v113_v59, 2  ;;  %v121_v5 = vrot.slane %v120_v62, 2 }
  0x23   :  { %v88_v3 = vrot.slane %v87_v60, 1  ;;  %v108_v4 = vadd.f32 %v107_v61, %v106_v53  ;;  %v127_v6 = vadd.f32 %v126_v63, %v125_v55  ;;  %v82_v25 = vadd.f32 %v81_v7, %v80_v56 }
  0x24   :  { %v95_v8 = vrot.slane %v94_v0, 1  ;;  %v102_v9 = vrot.slane %v101_v1, 1  ;;  %v115_v10 = vadd.f32 %v114_v2, %v113_v59  ;;  %v122_v13 = vadd.f32 %v121_v5, %v120_v62 }
  0x25   :  { %v89_v11 = vadd.f32 %v88_v3, %v87_v60  ;;  %v109_v12 = vrot.slane %v108_v4, 1  ;;  %v128_v14 = vrot.slane %v127_v6, 2 }
  0x26   :  { %v96_v15 = vadd.f32 %v95_v8, %v94_v0  ;;  %v103_v16 = vadd.f32 %v102_v9, %v101_v1  ;;  %v116_v17 = vrot.slane %v115_v10, 1  ;;  %v123_v19 = vrot.slane %v122_v13, 1 }
  0x27   :  { %v110_v18 = vadd.f32 %v109_v12, %v108_v4  ;;  %v129_v20 = vadd.f32 %v128_v14, %v127_v6  ;;  %v140_v21 = vrot.slane %v89_v11, 7 }
  0x28   :  { %v117_v22 = vadd.f32 %v116_v17, %v115_v10  ;;  %v141_v23 = vrot.slane %v96_v15, 6  ;;  %v142_v24 = vrot.slane %v103_v16, 5  ;;  %v124_v26 = vadd.f32 %v123_v19, %v122_v13 }
  0x29   :  { %v130_v27 = vrot.slane %v129_v20, 1  ;;  %v143_v28 = vrot.slane %v110_v18, 4  ;;  %v148_v32 = vsel %vm147_vm1, %v82_v25, %v140_v21 }
  0x2a   :  { %v144_v29 = vrot.slane %v117_v22, 3  ;;  %v145_v31 = vrot.slane %v124_v26, 2  ;;  %v150_v33 = vsel %vm149_vm2, %v141_v23, %v142_v24 }
  0x2b   :  { %v131_v30 = vadd.f32 %v130_v27, %v129_v20  ;;  %v151_v36 = vsel %vm75_vm0, %v148_v32, %v150_v33 }
  0x2c   :  { %v153_v35 = vsel %vm152_vm3, %v143_v28, %v144_v29 }
  0x2d   :  { %v146_v34 = vrot.slane %v131_v30, 1 }
  0x2f   :  { %v155_v37 = vsel %vm154_vm4, %v145_v31, %v146_v34 }
  0x30   :  { %v157_v38 = vsel %vm156_vm5, %v153_v35, %v155_v37 }
  0x31   :  { %v159_v39 = vsel %vm158_vm6, %v151_v36, %v157_v38 }
  0x32   :  { %161 = vst [vmem:[#allocation6] sm:$0xff] %v159_v39 }
  0x33   :  { %183 = dma.vmem_to_hbm [thread:$0]  %s179_s18, 128, %s181_s21, [#allocation7]  }
  0x34   :  { %274 = dma.done.wait [#allocation4], 256  }
  0x35   :  { %275 = vsyncadd [#allocation4], 4294967040 }
  0x36   :  { %276 = dma.done.wait [#allocation7], 128  }
  0x37   :  { %277 = vsyncadd [#allocation7], 4294967168 }
  0x38   :  { %192 = vsyncpa [#allocation3], 1 }
  0x39   :  { %193 = vsyncpa [#allocation4], 1 }
  0x3a   :  { %194 = vsyncpa [#allocation7], 1 }

</bundles_post_ra>
